<compile_context>
chip_gen: v6e
topology: v6e:2x2x1
jax: 0.10.0
libtpu: 0.0.40
codegen_flags: <defaults>
</compile_context>

<pallas_src>
import functools

import jax
import jax.numpy as jnp
from jax.experimental import pallas as pl
from jax.experimental.pallas import tpu as pltpu


# --------------------------------------------------------------------------- #
# Kernel
# --------------------------------------------------------------------------- #
def _custom_block_kernel(x_ref, w_ref, b_ref, o_ref, *,
                         shift_a, shift_b, sw, w_cols, imgs_per_step):
    """Fused roll -> folded 1x1-conv-chain matmul -> ReLU -> residual.

    x_ref, o_ref : (B, C, H*W) f32  VMEM blocks (B images per grid step)
    w_ref        : (C, C)      bf16 folded weight, output-major (y = W @ x)
    b_ref        : (C, 1)      f32  folded bias (conv biases + BN folded)
    shift_a/b    : static flat roll shifts (see module docstring)
    sw, w_cols   : static W-roll shift and image width (for the lane mask)
    """
    _, c, hw = x_ref.shape
    w_bf = w_ref[...]                      # bf16, resident across the loop
    bias = b_ref[...]                      # f32 (C, 1), broadcasts over lanes

    if sw:
        # lane position p -> (p mod W) < sw selects the "wrapped" roll.
        lane = jax.lax.broadcasted_iota(jnp.int32, (c, hw), 1)
        take_b = (lane % w_cols) < sw

    for b in range(imgs_per_step):         # static unroll over images in block
        x = x_ref[b]                       # (C, HW) f32; also the residual

        # torch.roll(H, sh) then torch.roll(W, sw), expressed on the flat axis.
        if sw:
            ra = pltpu.roll(x, shift_a, axis=1) if shift_a else x
            rb = pltpu.roll(x, shift_b, axis=1) if shift_b else x
            xr = jnp.where(take_b, rb, ra)
        else:
            xr = pltpu.roll(x, shift_a, axis=1) if shift_a else x

        # Single folded matmul on the MXU: bf16 operands, f32 accumulation.
        y = jnp.dot(w_bf, xr.astype(jnp.bfloat16),
                    preferred_element_type=jnp.float32) + bias

        # ReLU + residual (identity is the UN-rolled x), f32, lane-dense store.
        o_ref[b] = jnp.maximum(y, 0.0) + x


# --------------------------------------------------------------------------- #
# Parameter folding (wrapper side, f32, HIGHEST precision)
# --------------------------------------------------------------------------- #
def fold_params(p, eps=1e-5):
    """Collapse conv1 . custom_conv . conv2 . BN(eval) into (W_om, b_col).

    Row-vector form:  y = ((x@W1t+b1)@Wct+bc)@W2t+b2 = x@We + be
                      BN(y) = (y - mu)*gamma/sqrt(var+eps) + beta = x@Wf + bf
    Returned output-major for the NCHW kernel:  y[out, pix] = W_om @ x + b_col.
    """
    hp = jax.lax.Precision.HIGHEST
    we = jnp.dot(jnp.dot(p["w1_t"], p["wc_t"], precision=hp),
                 p["w2_t"], precision=hp)
    be = jnp.dot(jnp.dot(p["b1"], p["wc_t"], precision=hp) + p["bc"],
                 p["w2_t"], precision=hp) + p["b2"]
    s = p["bn_gamma"] * jax.lax.rsqrt(p["bn_var"] + eps)          # (1, C)
    wf = we * s                                                    # (in, out)
    bf = (be - p["bn_mean"]) * s + p["bn_beta"]                    # (1, C)
    w_om = jnp.transpose(wf).astype(jnp.bfloat16)                  # (out, in)
    b_col = jnp.transpose(bf)                                      # (C, 1) f32
    return w_om, b_col


def _pick_imgs_per_step(n, bytes_per_image, target_bytes=2 << 20):
    """Largest divisor of n with block <= ~2 MiB and >= 2 parallel grid steps."""
    best = 1
    for d in range(1, n + 1):
        if n % d:
            continue
        if d * bytes_per_image > target_bytes:
            continue
        if n >= 2 and n // d < 2:       # keep both v7x TensorCores busy
            continue
        best = d
    return best


# --------------------------------------------------------------------------- #
# Wrapper
# --------------------------------------------------------------------------- #
@functools.partial(jax.jit, static_argnums=(2,))
def custom_block_forward(x_nchw, params, size):
    """x_nchw: (N, C, H, W) float32; params: dict (see init_params); size: (h,w)."""
    n, c, hh, ww = x_nchw.shape
    hw = hh * ww
    sh = (size[0] // 4) % hh
    sw = (size[1] // 4) % ww
    shift_a = (sh * ww + sw) % hw              # flat roll, lanes with p%W >= sw
    shift_b = (sh * ww + sw - ww) % hw         # flat roll, lanes with p%W <  sw

    w_om, b_col = fold_params(params)

    # Free reshape (trailing-dim collapse, no transpose, no HBM pass).
    x_flat = x_nchw.reshape(n, c, hw)

    bytes_per_image = c * hw * 4
    imgs = _pick_imgs_per_step(n, bytes_per_image)

    kernel = functools.partial(_custom_block_kernel,
                               shift_a=shift_a, shift_b=shift_b,
                               sw=sw, w_cols=ww, imgs_per_step=imgs)

    img_spec = pl.BlockSpec((imgs, c, hw), lambda i: (i, 0, 0))

    out_flat = pl.pallas_call(
        kernel,
        out_shape=jax.ShapeDtypeStruct((n, c, hw), jnp.float32),
        grid=(n // imgs,),
        in_specs=[
            img_spec,                                   # x, 1 read per image
            pl.BlockSpec((c, c), lambda i: (0, 0)),     # folded weight (bf16)
            pl.BlockSpec((c, 1), lambda i: (0, 0)),     # folded bias (f32)
        ],
        out_specs=img_spec,                             # 1 write per image
        compiler_params=pltpu.CompilerParams(
            dimension_semantics=("parallel",),
            vmem_limit_bytes=32 * 1024 * 1024),         # safe on v5e/v6e/v7x
    )(x_flat, w_om, b_col)

    return out_flat.reshape(n, c, hh, ww)               # free reshape back


# --------------------------------------------------------------------------- #
# Synthetic parameters + pure-JAX reference
# --------------------------------------------------------------------------- #
def init_params(key, proj_dim):
    """Deterministic synthetic parameters (shapes from CustomBlock.__init__)."""
    ks = jax.random.split(key, 6)
    scale = 1.0 / jnp.sqrt(proj_dim)

    def conv_w_t(k):
        # torch conv weight is (out, in, 1, 1); store the (in, out) transpose
        # so y = x_pixels @ W^T matches conv2d(x, W).
        w = jax.random.normal(k, (proj_dim, proj_dim), jnp.float32) * scale
        return jnp.transpose(w)

    def bias(k):
        return jax.random.normal(k, (1, proj_dim), jnp.float32) * scale

    return {
        "w1_t": conv_w_t(ks[0]), "b1": bias(ks[1]),
        "wc_t": conv_w_t(ks[2]), "bc": bias(ks[3]),   # custom_conv as 1x1 conv
        "w2_t": conv_w_t(ks[4]), "b2": bias(ks[5]),
        "bn_gamma": jnp.linspace(0.5, 1.5, proj_dim, dtype=jnp.float32)[None, :],
        "bn_beta": jnp.linspace(-0.1, 0.1, proj_dim, dtype=jnp.float32)[None, :],
        "bn_mean": jnp.linspace(-0.2, 0.2, proj_dim, dtype=jnp.float32)[None, :],
        "bn_var": jnp.linspace(0.8, 1.2, proj_dim, dtype=jnp.float32)[None, :],
    }


def reference_forward(x, p, size):
    """Pure-JAX unfused f32 reference (validates the fold and both rolls)."""
    hp = jax.lax.Precision.HIGHEST
    xr = jnp.roll(jnp.roll(x, size[0] // 4, axis=2), size[1] // 4, axis=3)
    n, c, hh, ww = x.shape
    h = jnp.transpose(xr, (0, 2, 3, 1)).reshape(-1, c)
    h = jnp.dot(h, p["w1_t"], precision=hp) + p["b1"]
    h = jnp.dot(h, p["wc_t"], precision=hp) + p["bc"]
    h = jnp.dot(h, p["w2_t"], precision=hp) + p["b2"]
    h = (h - p["bn_mean"]) / jnp.sqrt(p["bn_var"] + 1e-5) * p["bn_gamma"] \
        + p["bn_beta"]
    h = jnp.maximum(h, 0.0)
    h = jnp.transpose(h.reshape(n, hh, ww, c), (0, 3, 1, 2))
    return h + x


# --------------------------------------------------------------------------- #
# Main
# --------------------------------------------------------------------------- #
if __name__ == "__main__":
    key = jax.random.PRNGKey(0)
    kp, kx1, kx2, kx3 = jax.random.split(key, 4)

    C, H, W = 64, 8, 16                     # proj_dim=64 (module default), small spatial
    params = init_params(kp, C)

    # Kernel matmul is bf16 with f32 accumulation -> tolerance reflects bf16.
    TOL = dict(atol=2e-2, rtol=2e-2)

    configs = [
        # (batch, key,  size)      size=(36,100) is the module default -> sh=1, sw=9
        (2, kx1, (36, 100)),       # 1 image / grid step, grid=(2,)
        (4, kx2, (8, 16)),         # 2 images / grid step (multi-image block path)
        (2, kx3, (36, 64)),        # sw == 0 path (single flat roll)
    ]

    for n, kx, size in configs:
        x = jax.random.normal(kx, (n, C, H, W), jnp.float32)
        out = jax.block_until_ready(custom_block_forward(x, params, size))
        ref = reference_forward(x, params, size)
        assert out.shape == x.shape
        assert jnp.allclose(out, ref, **TOL), \
            f"size={size} n={n} max abs err {float(jnp.max(jnp.abs(out - ref)))}"

    print("KERNEL_OK")
</pallas_src>

<mosaic_0001>
module attributes {stable_mosaic.version = 11 : i64} {
  func.func @_custom_block_kernel(%arg0: i32, %arg1: memref<1x64x128xf32, #tpu.memory_space<vmem>>, %arg2: memref<64x64xbf16, #tpu.memory_space<vmem>>, %arg3: memref<64x1xf32, #tpu.memory_space<vmem>>, %arg4: memref<1x64x128xf32, #tpu.memory_space<vmem>>) attributes {dimension_semantics = [#tpu.dimension_semantics<parallel>], iteration_bounds = array<i64: 2>, scalar_prefetch = 0 : i64, scratch_operands = 0 : i64, tpu.core_type = #tpu.core_type<tc>, window_params = [{transform_indices = @transform_0, window_bounds = array<i64: 1, 64, 128>}, {pipeline_mode = #tpu.pipeline_mode<synchronous>, transform_indices = @transform_1, window_bounds = array<i64: 64, 64>}, {pipeline_mode = #tpu.pipeline_mode<synchronous>, transform_indices = @transform_2, window_bounds = array<i64: 64, 1>}, {transform_indices = @transform_3, window_bounds = array<i64: 1, 64, 128>}]} {
    %c0 = arith.constant 0 : index
    %c0_0 = arith.constant 0 : index
    %0 = vector.load %arg2[%c0, %c0_0] : memref<64x64xbf16, #tpu.memory_space<vmem>>, vector<64x64xbf16>
    %c0_1 = arith.constant 0 : index
    %c0_2 = arith.constant 0 : index
    %1 = vector.load %arg3[%c0_1, %c0_2] : memref<64x1xf32, #tpu.memory_space<vmem>>, vector<64x1xf32>
    %2 = tpu.iota {dimensions = array<i32: 1>} : vector<64x128xi32>
    %c16_i32 = arith.constant 16 : i32
    %c0_i32 = arith.constant 0 : i32
    %3 = arith.cmpi eq, %c16_i32, %c0_i32 : i32
    %c1_i32 = arith.constant 1 : i32
    %4 = arith.select %3, %c1_i32, %c16_i32 : i32
    %5 = vector.broadcast %4 : i32 to vector<64x128xi32>
    %6 = arith.remsi %2, %5 : vector<64x128xi32>
    %c0_i32_3 = arith.constant 0 : i32
    %7 = vector.broadcast %c0_i32_3 : i32 to vector<64x128xi32>
    %8 = arith.cmpi ne, %6, %7 : vector<64x128xi32>
    %c0_i32_4 = arith.constant 0 : i32
    %9 = vector.broadcast %c0_i32_4 : i32 to vector<64x128xi32>
    %10 = arith.cmpi slt, %6, %9 : vector<64x128xi32>
    %c0_i32_5 = arith.constant 0 : i32
    %11 = arith.cmpi slt, %4, %c0_i32_5 : i32
    %12 = vector.broadcast %11 : i1 to vector<64x128xi1>
    %13 = vector.broadcast %12 : vector<64x128xi1> to vector<64x128xi1>
    %14 = arith.xori %10, %13 : vector<64x128xi1>
    %15 = arith.andi %14, %8 : vector<64x128xi1>
    %16 = vector.broadcast %4 : i32 to vector<64x128xi32>
    %17 = arith.addi %6, %16 : vector<64x128xi32>
    %18 = arith.select %15, %17, %6 : vector<64x128xi1>, vector<64x128xi32>
    %c9_i32 = arith.constant 9 : i32
    %19 = vector.broadcast %c9_i32 : i32 to vector<64x128xi32>
    %20 = arith.cmpi slt, %18, %19 : vector<64x128xi32>
    %c0_6 = arith.constant 0 : index
    %c0_7 = arith.constant 0 : index
    %c0_8 = arith.constant 0 : index
    %21 = vector.load %arg1[%c0_6, %c0_7, %c0_8] : memref<1x64x128xf32, #tpu.memory_space<vmem>>, vector<1x64x128xf32>
    %22 = vector.shape_cast %21 : vector<1x64x128xf32> to vector<64x128xf32>
    %c25_i32 = arith.constant 25 : i32
    %23 = tpu.dynamic_rotate %22 by %c25_i32 dim 1 : vector<64x128xf32>, i32 -> vector<64x128xf32>
    %c9_i32_9 = arith.constant 9 : i32
    %24 = tpu.dynamic_rotate %22 by %c9_i32_9 dim 1 : vector<64x128xf32>, i32 -> vector<64x128xf32>
    %25 = arith.select %20, %24, %23 : vector<64x128xi1>, vector<64x128xf32>
    %26 = arith.truncf %25 : vector<64x128xf32> to vector<64x128xbf16>
    %cst = arith.constant dense<0.000000e+00> : vector<64x128xf32>
    %27 = tpu.matmul %0, %26, %cst {dimension_numbers = #tpu.dot_dimension_numbers<[1], [0], [0], [1], [0, 0, 1, 1], [], []>} : vector<64x64xbf16>, vector<64x128xbf16>, vector<64x128xf32> -> vector<64x128xf32>
    %28 = vector.broadcast %1 : vector<64x1xf32> to vector<64x128xf32>
    %29 = arith.addf %27, %28 : vector<64x128xf32>
    %cst_10 = arith.constant 0.000000e+00 : f32
    %30 = vector.broadcast %cst_10 : f32 to vector<64x128xf32>
    %31 = arith.maximumf %29, %30 : vector<64x128xf32>
    %32 = arith.addf %31, %22 : vector<64x128xf32>
    %c0_11 = arith.constant 0 : index
    %c0_12 = arith.constant 0 : index
    %c0_13 = arith.constant 0 : index
    %33 = vector.load %arg4[%c0_11, %c0_12, %c0_13] : memref<1x64x128xf32, #tpu.memory_space<vmem>>, vector<1x64x128xf32>
    %34 = vector.shape_cast %33 : vector<1x64x128xf32> to vector<64x128xf32>
    %35 = vector.shape_cast %32 : vector<64x128xf32> to vector<1x64x128xf32>
    tpu.vector_store %arg4[%c0_11, %c0_12, %c0_13], %35 {strides = array<i32>} : memref<1x64x128xf32, #tpu.memory_space<vmem>>, vector<1x64x128xf32>,
    return
  }
  func.func @transform_0(%arg0: i32) -> (i32, i32, i32) {
    %c0_i32 = arith.constant 0 : i32
    %c0_i32_0 = arith.constant 0 : i32
    %c0_i32_1 = arith.constant 0 : i32
    return %arg0, %c0_i32, %c0_i32_0 : i32, i32, i32
  }
  func.func @transform_1(%arg0: i32) -> (i32, i32) {
    %c0_i32 = arith.constant 0 : i32
    %c0_i32_0 = arith.constant 0 : i32
    %c0_i32_1 = arith.constant 0 : i32
    return %c0_i32, %c0_i32_0 : i32, i32
  }
  func.func @transform_2(%arg0: i32) -> (i32, i32) {
    %c0_i32 = arith.constant 0 : i32
    %c0_i32_0 = arith.constant 0 : i32
    %c0_i32_1 = arith.constant 0 : i32
    return %c0_i32, %c0_i32_0 : i32, i32
  }
  func.func @transform_3(%arg0: i32) -> (i32, i32, i32) {
    %c0_i32 = arith.constant 0 : i32
    %c0_i32_0 = arith.constant 0 : i32
    %c0_i32_1 = arith.constant 0 : i32
    return %arg0, %c0_i32, %c0_i32_0 : i32, i32, i32
  }
}

</mosaic_0001>

<bundles_post_ra>
// kernel: custom_block_forward.1
= control target key start
LH: loop header
LB: loop body
LE: loop exit
PB: predicated region body
PF: predicated region fallthrough
CT: control target
= control target key end

     0   :  { %s613_s12 = smov 0   ;;  %s739_s0 = inlined_call_operand.vmem [shape: f32[2,64,128], index: 0, kind: input, shape index: {}]   ;;  %s740_s1 = inlined_call_operand.vmem [shape: bf16[64,64], index: 1, kind: input, shape index: {}]   ;;  %s741_s2 = inlined_call_operand.vmem [shape: f32[64,1], index: 2, kind: input, shape index: {}]   ;;  %s742_s3 = inlined_call_operand.vmem [shape: f32[2,64,128], index: 3, kind: output, shape index: {}]  }
   0x1 LB: > { %s472_s13 = sadd.s32 4294967295, %s588_s12   ;;  %p476_p0 = scmp.ge.s32.totalorder %s588_s12, 1  ;;  %s588_s12 = sphi %s613_s12, %s13_s12  }
   0x2   : > { %p137_p1 = scmp.lt.s32.totalorder %s588_s12, 3 }
   0x4   : > { %p138_p2 = pnand %p476_p0, %p137_p1 }
   0x5   : > { %p161_p3 = scmp.lt.s32.totalorder (!%p138_p2), %s472_s13, 1  ;;  %s590_s18 = smov (!%p138_p2), 25  }
   0x6   : > { %141 = sbr.rel (%p138_p2) target bundleno = 364 (0x16c), region = 32  ;;  %s591_s19 = smov (!%p138_p2), 9  }
   0xb   : > { %s746_s13 = smov (!%p161_p3, %s472_s13), 1  ;;  %v578_v12 = vld [vmem:[%s740_s1] sm:$0xff]   ;;  %vm315_vm0 = vcmask 523264   ;;  %v579_v13 = vld [vmem:[%s740_s1 + $0x10] sm:$0xff]   ;;  %v592_v14 = vmov 0   ;;  %v181_v16 = vld [vmem:[%s741_s2 + $0x8] sm:$0xff]  ;;  %v188_v23 = vlaneseq }
   0xc   : > { %s491_s14 = sshll.u32 %s746_s13, 6  ;;  %509 = vmatprep.mubr.msk.bf16.mxu0 %vm315_vm0, %v578_v12  ;;  %513 = vmatprep.mubr.msk.bf16.mxu1 %vm315_vm0, %v579_v13  ;;  %v180_v15 = vld [vmem:[%s741_s2] sm:$0xff]  ;;  %v183_v17 = vld [vmem:[%s741_s2 + $0x18] sm:$0xff]  ;;  %v182_v18 = vld [vmem:[%s741_s2 + $0x10] sm:$0xff] }
   0xd   : > { %s165_s17 = scalar_lea.vmem %s739_s0, %s491_s14  ;;  %576 = vset.pattern.permute.xlu0 %v592_v14  ;;  %577 = vset.pattern.permute.xlu1 %v592_v14  ;;  %v185_v19 = vld [vmem:[%s741_s2 + $0x28] sm:$0xff]  ;;  %v184_v20 = vld [vmem:[%s741_s2 + $0x20] sm:$0xff]  ;;  %v187_v21 = vld [vmem:[%s741_s2 + $0x38] sm:$0xff]  ;;  %v189_v24 = vand.u32 127, %v188_v23  ;;  %s718_s22 = scalar_lea.vmem %s742_s3, %s491_s14 }
   0xe   : > { %v629_v0 = vld [vmem:[%s165_s17 + $0x30] sm:$0xff]  ;;  %v631_v1 = vld [vmem:[%s165_s17 + $0x38] sm:$0xff]  ;;  %v633_v2 = vld [vmem:[%s165_s17 + $0x20] sm:$0xff] }
   0xf   : > { %v536_v3 = vpack.i.bf16 %v631_v1, %v629_v0  ;;  %v637_v4 = vld [vmem:[%s165_s17 + $0x28] sm:$0xff]  ;;  %v641_v6 = vld [vmem:[%s165_s17 + $0x10] sm:$0xff]  ;;  %v643_v7 = vld [vmem:[%s165_s17 + $0x18] sm:$0xff]  ;;  %v194_v26 = vand.u32 15, %v189_v24 }
  0x10   : > { %v546_v5 = vpack.i.bf16 %v637_v4, %v633_v2  ;;  %v556_v8 = vpack.i.bf16 %v643_v7, %v641_v6  ;;  %v647_v9 = vld [vmem:[%s165_s17] sm:$0xff]  ;;  %v649_v10 = vld [vmem:[%s165_s17 + $0x8] sm:$0xff]  ;;  %v186_v22 = vld [vmem:[%s741_s2 + $0x30] sm:$0xff] }
  0x11   : > { %537 = vrot.lane.b32.xlu0 %v536_v3, %s590_s18  ;;  %v566_v11 = vpack.i.bf16 %v649_v10, %v647_v9  ;;  %vm685_vm1 = vcmp.lt.s32.totalorder %v194_v26, 9  ;;  %v580_v63 = vld [vmem:[%s740_s1 + $0x8] sm:$0xff]  }
  0x12   : > { %547 = vrot.lane.b32.xlu1 %v546_v5, %s590_s18 }
  0x15   : > { %542 = vrot.lane.b32.xlu0 %v536_v3, %s591_s19  ;;  %v581_v3 = vld [vmem:[%s740_s1 + $0x18] sm:$0xff]  }
  0x16   : > { %552 = vrot.lane.b32.xlu1 %v546_v5, %s591_s19 }
  0x19   : > { %557 = vrot.lane.b32.xlu0 %v556_v8, %s590_s18 }
  0x1a   : > { %562 = vrot.lane.b32.xlu1 %v556_v8, %s591_s19 }
  0x1d   : > { %567 = vrot.lane.b32.xlu0 %v566_v11, %s590_s18 }
  0x1e   : > { %572 = vrot.lane.b32.xlu1 %v566_v11, %s591_s19 }
  0x21   : > { %257 = vperm.xlu0 %576, %v180_v15  }
  0x22   : > { %262 = vperm.xlu1 %577, %v181_v16  }
  0x25   : > { %272 = vperm.xlu0 %576, %v183_v17  }
  0x26   : > { %267 = vperm.xlu1 %577, %v182_v18  }
  0x29   : > { %282 = vperm.xlu0 %576, %v185_v19  }
  0x2a   : > { %277 = vperm.xlu1 %577, %v184_v20  }
  0x2d   : > { %292 = vperm.xlu0 %576, %v187_v21  }
  0x2e   : > { %287 = vperm.xlu1 %577, %v186_v22  }
  0x83   : > { %v538_v25 = vpop.permute.xlu0 %537 }
  0x84   : > { %v548_v27 = vpop.permute.xlu1 %547  ;;  %v540_v32 = vunpack.i.h.bf16 %v538_v25  ;;  %v539_v33 = vunpack.i.l.bf16 %v538_v25 }
  0x85   : > { %v550_v28 = vunpack.i.h.bf16 %v548_v27  ;;  %v549_v29 = vunpack.i.l.bf16 %v548_v27 }
  0x87   : > { %v543_v31 = vpop.permute.xlu0 %542 }
  0x88   : > { %v545_v34 = vunpack.i.h.bf16 %v543_v31  ;;  %v544_v35 = vunpack.i.l.bf16 %v543_v31  ;;  %v553_v36 = vpop.permute.xlu1 %552 }
  0x89   : > { %v555_v37 = vunpack.i.h.bf16 %v553_v36  ;;  %v554_v38 = vunpack.i.l.bf16 %v553_v36 }
  0x8a   : > { %v249_v39 = vsel %vm685_vm1, %v544_v35, %v539_v33  ;;  %v250_v40 = vsel %vm685_vm1, %v545_v34, %v540_v32 }
  0x8b   : > { %v254_v41 = vpack.c.bf16 %v250_v40, %v249_v39  ;;  %v247_v42 = vsel %vm685_vm1, %v554_v38, %v549_v29  ;;  %v248_v43 = vsel %vm685_vm1, %v555_v37, %v550_v28  ;;  %v558_v44 = vpop.permute.xlu0 %557 }
  0x8c   : > { %v563_v45 = vpop.permute.xlu1 %562  ;;  %v560_v46 = vunpack.i.h.bf16 %v558_v44  ;;  %v559_v47 = vunpack.i.l.bf16 %v558_v44  ;;  %v253_v48 = vpack.c.bf16 %v248_v43, %v247_v42 }
  0x8d   : > { %501 = vmatprep.subr.bf16.mxu0 %v254_v41  ;;  %517 = vmatprep.subr.bf16.mxu1 %v254_v41  ;;  %v565_v49 = vunpack.i.h.bf16 %v563_v45  ;;  %v564_v50 = vunpack.i.l.bf16 %v563_v45 }
  0x8e   : > { %502 = vmatpush3.bf16.msra.mxu0 %v254_v41  ;;  %521 = vmatpush3.bf16.msra.mxu1 %v254_v41 }
  0x8f   : > { %503 = vmatprep.subr.bf16.mxu0 %v253_v48  ;;  %518 = vmatprep.subr.bf16.mxu1 %v253_v48  ;;  %v246_v51 = vsel %vm685_vm1, %v565_v49, %v560_v46  ;;  %v245_v52 = vsel %vm685_vm1, %v564_v50, %v559_v47  ;;  %v568_v53 = vpop.permute.xlu0 %567 }
  0x90   : > { %v252_v54 = vpack.c.bf16 %v246_v51, %v245_v52  ;;  %v573_v55 = vpop.permute.xlu1 %572  ;;  %v570_v56 = vunpack.i.h.bf16 %v568_v53  ;;  %v569_v57 = vunpack.i.l.bf16 %v568_v53 }
  0x91   : > { %v575_v58 = vunpack.i.h.bf16 %v573_v55  ;;  %v574_v59 = vunpack.i.l.bf16 %v573_v55 }
  0x92   : > { %504 = vmatpush3.bf16.msra.mxu0 %v253_v48  ;;  %522 = vmatpush3.bf16.msra.mxu1 %v253_v48 }
  0x93   : > { %v244_v60 = vsel %vm685_vm1, %v575_v58, %v570_v56  ;;  %v243_v61 = vsel %vm685_vm1, %v574_v59, %v569_v57  ;;  %505 = vmatprep.subr.bf16.mxu0 %v252_v54  ;;  %519 = vmatprep.subr.bf16.mxu1 %v252_v54 }
  0x94   : > { %v251_v62 = vpack.c.bf16 %v244_v60, %v243_v61 }
  0x96   : > { %506 = vmatpush3.bf16.msra.mxu0 %v252_v54  ;;  %523 = vmatpush3.bf16.msra.mxu1 %v252_v54 }
  0x97   : > { %507 = vmatprep.subr.bf16.mxu0 %v251_v62  ;;  %520 = vmatprep.subr.bf16.mxu1 %v251_v62 }
  0x9a   : > { %508 = vmatpush3.bf16.msra.mxu0 %v251_v62  ;;  %524 = vmatpush3.bf16.msra.mxu1 %v251_v62 }
  0x9c   : > { %v258_v8 = vpop.permute.xlu0 %257 }
  0x9d   : > { %510 = vmatmul.mubr.msk.bf16.vlgmr.msra.gmra.mxu0 %vm315_vm0, %v580_v63  ;;  %514 = vmatmul.mubr.msk.bf16.vlgmr.msra.gmra.mxu1 %vm315_vm0, %v581_v3  ;;  %v263_v5 = vpop.permute.xlu1 %262 }
  0xa0   : > { %v273_v12 = vpop.permute.xlu0 %272 }
  0xa1   : > { %v268_v11 = vpop.permute.xlu1 %267 }
  0xa4   : > { %v283_v14 = vpop.permute.xlu0 %282 }
  0xa5   : > { %v278_v13 = vpop.permute.xlu1 %277 }
  0xa8   : > { %v293_v28 = vpop.permute.xlu0 %292 }
  0xa9   : > { %v288_v15 = vpop.permute.xlu1 %287 }
 0x15d   : > { %v511_v16 = vpop.f32.mrf.mxu0  ;;  %v515_v17 = vpop.f32.mrf.mxu1 }
 0x15e   : > { %v371_v18 = vadd.f32 %v511_v16, %v268_v11  ;;  %v387_v19 = vadd.f32 %v515_v17, %v288_v15 }
 0x15f   : > { %v362_v20 = vpop.f32.mrf.mxu0  ;;  %v378_v21 = vpop.f32.mrf.mxu1 }
 0x160   : > { %v395_v22 = vmax.f32 %v371_v18, 0.0  ;;  %v399_v23 = vmax.f32 %v387_v19, 0.0  ;;  %v363_v24 = vadd.f32 %v362_v20, %v258_v8  ;;  %v379_v25 = vadd.f32 %v378_v21, %v278_v13 }
 0x161   : > { %v512_v26 = vpop.f32.mrf.mxu0  ;;  %v516_v27 = vpop.f32.mrf.mxu1 }
 0x162   : > { %v403_v29 = vadd.f32 %v395_v22, %v641_v6  ;;  %v407_v30 = vadd.f32 %v399_v23, %v629_v0  ;;  %v393_v31 = vmax.f32 %v363_v24, 0.0  ;;  %v397_v32 = vmax.f32 %v379_v25, 0.0 }
 0x163   : > { %v374_v33 = vadd.f32 %v512_v26, %v273_v12  ;;  %v390_v34 = vadd.f32 %v516_v27, %v293_v28  ;;  %v365_v35 = vpop.f32.mrf.mxu0  ;;  %v381_v36 = vpop.f32.mrf.mxu1 }
 0x164   : > { %411 = vst [vmem:[%s718_s22 + $0x10] sm:$0xff] %v403_v29  ;;  %415 = vst [vmem:[%s718_s22 + $0x30] sm:$0xff] %v407_v30  ;;  %v401_v37 = vadd.f32 %v393_v31, %v647_v9  ;;  %v405_v38 = vadd.f32 %v397_v32, %v633_v2  ;;  %v366_v6 = vadd.f32 %v365_v35, %v263_v5 }
 0x165   : > { %v382_v39 = vadd.f32 %v381_v36, %v283_v14  ;;  %v396_v0 = vmax.f32 %v374_v33, 0.0  ;;  %v400_v40 = vmax.f32 %v390_v34, 0.0 }
 0x166   : > { %409 = vst [vmem:[%s718_s22] sm:$0xff] %v401_v37  ;;  %413 = vst [vmem:[%s718_s22 + $0x20] sm:$0xff] %v405_v38  ;;  %v394_v41 = vmax.f32 %v366_v6, 0.0 }
 0x167   : > { %v398_v42 = vmax.f32 %v382_v39, 0.0  ;;  %v404_v43 = vadd.f32 %v396_v0, %v643_v7  ;;  %v408_v44 = vadd.f32 %v400_v40, %v631_v1 }
 0x168   : > { %v402_v45 = vadd.f32 %v394_v41, %v649_v10 }
 0x169   : > { %v406_v9 = vadd.f32 %v398_v42, %v637_v4  ;;  %412 = vst [vmem:[%s718_s22 + $0x18] sm:$0xff] %v404_v43  ;;  %416 = vst [vmem:[%s718_s22 + $0x38] sm:$0xff] %v408_v44 }
 0x16a   : > { %410 = vst [vmem:[%s718_s22 + $0x8] sm:$0xff] %v402_v45 }
 0x16b   : > { %414 = vst [vmem:[%s718_s22 + $0x28] sm:$0xff] %v406_v9 }
 0x16c PF: > { %s13_s12 = sadd.s32 1, %s588_s12  }
 0x16d   : > { %p10_p4 = scmp.ge.s32.totalorder %s13_s12, 4  }
 0x16f   :  { %12 = sbr.rel (!%p10_p4) target bundleno = 1 (0x1), region = 62 }

</bundles_post_ra>
